<compile_context>
chip_gen: v5e
topology: v5e:2x2
jax: 0.10.0
libtpu: 0.0.40
codegen_flags: <defaults>
</compile_context>

<pallas_src>
import jax
import jax.numpy as jnp
from jax import lax
from jax.experimental import pallas as pl
from jax.experimental.pallas import tpu as pltpu

K = 3          # kernel size
STRIDE = 2
PAD = 1
OUT_PAD = 1
EPS = 1e-5

# _KIDX[r][t]: ConvTranspose kernel index used by output phase r (even/odd)
# when reading input voxel m+t along one axis; None = no contribution.
#   od = 2*id - PAD + kd  ->  r=0: kd=1 (t=0);  r=1: kd=2 (t=0), kd=0 (t=1)
_KIDX = ((1, None), (2, 0))


def _round_up(x, m):
    return (x + m - 1) // m * m


def _phase_weight_matrix(w):
    """(Cin, Cout, 3,3,3) ConvTranspose weight -> (8*Cin, 8*Cout) phase matrix.

    Row block (td,th,tw): corner of the 2x2x2 input patch.
    Col block (rd,rh,rw): output phase (even/odd per axis).
    """
    cin, cout = w.shape[0], w.shape[1]
    zeros = jnp.zeros((cin, cout), w.dtype)
    row_blocks = []
    for td in (0, 1):
        for th in (0, 1):
            for tw in (0, 1):
                cols = []
                for rd in (0, 1):
                    for rh in (0, 1):
                        for rw in (0, 1):
                            kd = _KIDX[rd][td]
                            kh = _KIDX[rh][th]
                            kw = _KIDX[rw][tw]
                            if kd is None or kh is None or kw is None:
                                cols.append(zeros)
                            else:
                                cols.append(w[:, :, kd, kh, kw])
                row_blocks.append(jnp.concatenate(cols, axis=1))   # (Cin, 8*Cout)
    return jnp.concatenate(row_blocks, axis=0)                     # (8*Cin, 8*Cout)


def _conv_stats_kernel(x_ref, w_ref, y_ref, sum_ref, ssq_ref):
    # (bmf, f*8Cin)bf16 @ (f*8Cin, f*8Cout)bf16 -> f32 on the MXU.
    y = jnp.dot(x_ref[...], w_ref[...], preferred_element_type=jnp.float32)
    # bf16, lane-dense store (block-diagonal weight already folded the rows).
    y_ref[...] = y.astype(y_ref.dtype)
    # Per-grid-step partial BN statistics from the f32 accumulator; broadcast
    # across the 8-sublane block so the store tile is (8, lanes)-shaped and the
    # grid stays fully parallel (no cross-step accumulator).
    colsum = jnp.sum(y, axis=0, keepdims=True)          # (1, f*8Cout)
    colssq = jnp.sum(y * y, axis=0, keepdims=True)      # (1, f*8Cout)
    sum_ref[...] = jnp.broadcast_to(colsum[None], sum_ref.shape)
    ssq_ref[...] = jnp.broadcast_to(colssq[None], ssq_ref.shape)


def upsample_forward(x, w, b, gamma, beta, *, bm=1024):
    """x: (N, Cin, D, H, W) f32, w: (Cin, Cout, 3,3,3) -> (N, Cout, 2D, 2H, 2W)."""
    del b  # ConvTranspose bias cancels exactly under training-mode BatchNorm.
    N, Cin, D, H, W = x.shape
    Cout = w.shape[1]
    Do, Ho, Wo = 2 * D, 2 * H, 2 * W
    K8, C8 = 8 * Cin, 8 * Cout
    R = N * D * H * W            # one matmul row per *input* voxel (8 outputs/row)
    M = N * Do * Ho * Wo         # true output-voxel count (for BN statistics)

    # Lane-folding factor so the matmul output (and its bf16 store) is >=128
    # lanes wide.  The fold happens inside the matmul via a block-diagonal
    # weight, so the store needs no in-kernel relayout.  No-op when C8 >= 128.
    f = 128 // C8 if (C8 < 128 and 128 % C8 == 0) else 1
    Kf, Cf = f * K8, f * C8
    unit = 8 * f                 # folded row tile must keep 8 sublanes

    bm = max(unit, (min(bm, _round_up(R, unit)) // unit) * unit)

    def _need(bm_):              # double-buffered x/y tiles + weights + stats
        return 2 * bm_ * (K8 + C8) * 2 + 2 * Kf * Cf * 2 + 4 * 8 * Cf * 4

    # Keep the VMEM request well under v7x's 64 MiB physical VMEM.
    while bm > unit and _need(bm) > 40 * 1024 * 1024:
        bm = max(unit, (bm // 2 // unit) * unit)

    G = -(-R // bm)
    if G > 1 and G % 2:
        G += 1                   # even grid: both v7x TensorCores stay busy
    R_pad = G * bm
    bmf = bm // f

    # ---- XLA glue: 2x2x2-patch im2col (channels last), bf16, row-folded ----
    # TODO(synk): fusing this gather into the kernel (overlapping-plane
    # BlockSpecs / manual DMA) would remove the xcol HBM round-trip; a
    # BlockSpec cannot express the 3-axis shifted-window gather directly.
    x_cl = jnp.transpose(x, (0, 2, 3, 4, 1))                        # (N,D,H,W,Cin)
    xp = jnp.pad(x_cl, ((0, 0), (0, 1), (0, 1), (0, 1), (0, 0)))
    patches = [xp[:, td:td + D, th:th + H, tw:tw + W, :]
               for td in (0, 1) for th in (0, 1) for tw in (0, 1)]
    xcol = jnp.stack(patches, axis=-2).reshape(R, K8)
    xcol = jnp.pad(xcol, ((0, R_pad - R), (0, 0))).astype(jnp.bfloat16)
    xcol = xcol.reshape(R_pad // f, Kf)                             # free refold

    wmat = _phase_weight_matrix(w)                                  # (8Cin, 8Cout)
    if f > 1:
        wmat = jnp.kron(jnp.eye(f, dtype=wmat.dtype), wmat)         # block-diag
    wmat = wmat.astype(jnp.bfloat16)

    vmem_limit = int(min(48 * 1024 * 1024,
                         max(16 * 1024 * 1024, 2 * _need(bm))))

    # ---- Pallas kernel: phase-packed conv matmul + partial BN stats ----
    yf, psum, pssq = pl.pallas_call(
        _conv_stats_kernel,
        out_shape=(jax.ShapeDtypeStruct((R_pad // f, Cf), jnp.bfloat16),
                   jax.ShapeDtypeStruct((G, 8, Cf), jnp.float32),
                   jax.ShapeDtypeStruct((G, 8, Cf), jnp.float32)),
        grid=(G,),
        in_specs=[pl.BlockSpec((bmf, Kf), lambda i: (i, 0)),
                  pl.BlockSpec((Kf, Cf), lambda i: (0, 0))],
        out_specs=(pl.BlockSpec((bmf, Cf), lambda i: (i, 0)),
                   pl.BlockSpec((1, 8, Cf), lambda i: (i, 0, 0)),
                   pl.BlockSpec((1, 8, Cf), lambda i: (i, 0, 0))),
        compiler_params=pltpu.CompilerParams(
            dimension_semantics=("parallel",), vmem_limit_bytes=vmem_limit),
    )(xcol, wmat)

    # ---- tiny per-channel math (BatchNorm3d training-mode statistics) ----
    # Padded rows are all-zero (no bias added in-kernel), so they contribute 0
    # to both sums; divide by the true voxel count M.
    s_c = psum[:, 0, :].sum(axis=0).reshape(f, 8, Cout).sum(axis=(0, 1))
    ss_c = pssq[:, 0, :].sum(axis=0).reshape(f, 8, Cout).sum(axis=(0, 1))
    mean = s_c / M
    var = jnp.maximum(ss_c / M - mean * mean, 0.0)   # guard tiny negative var
    inv_std = lax.rsqrt(var + EPS)
    scale = gamma * inv_std
    shift = beta - mean * scale
    scale_cols = jnp.tile(scale, 8).reshape(1, C8)
    shift_cols = jnp.tile(shift, 8).reshape(1, C8)

    # ---- XLA epilogue: BN affine + ReLU fused into the depth-to-space pass ----
    # XLA fuses the elementwise ops into the phase->stride-2 interleave / NCDHW
    # transpose it must emit anyway, so this is a single read(bf16)+write(f32).
    y2d = yf.reshape(R_pad, C8)[:R].astype(jnp.float32)             # free refold
    o = jnp.maximum(y2d * scale_cols + shift_cols, 0.0)
    o = o.reshape(N, D, H, W, 2, 2, 2, Cout)
    o = jnp.transpose(o, (0, 7, 1, 4, 2, 5, 3, 6))
    return o.reshape(N, Cout, Do, Ho, Wo)


def upsample_reference(x, w, b, gamma, beta):
    """Pure-JAX reference (XLA transposed conv + BN + ReLU), PyTorch-faithful."""
    Cout = w.shape[1]
    wt = jnp.flip(w, axis=(2, 3, 4)).transpose(1, 0, 2, 3, 4)       # (Cout,Cin,3,3,3)
    lp, rp = K - 1 - PAD, K - 1 - PAD + OUT_PAD
    y = lax.conv_general_dilated(
        x, wt, window_strides=(1, 1, 1),
        padding=[(lp, rp)] * 3, lhs_dilation=(STRIDE,) * 3,
        dimension_numbers=('NCDHW', 'OIDHW', 'NCDHW'),
        precision=lax.Precision.HIGHEST)
    y = y + b.reshape(1, Cout, 1, 1, 1)
    mean = y.mean(axis=(0, 2, 3, 4), keepdims=True)
    var = ((y - mean) ** 2).mean(axis=(0, 2, 3, 4), keepdims=True)
    yn = (y - mean) / jnp.sqrt(var + EPS)
    yn = yn * gamma.reshape(1, Cout, 1, 1, 1) + beta.reshape(1, Cout, 1, 1, 1)
    return jnp.maximum(yn, 0.0)


if __name__ == "__main__":
    key = jax.random.PRNGKey(0)
    k1, k2, k3, k4, k5 = jax.random.split(key, 5)

    N, Cin, Cout, D, H, W = 2, 4, 8, 8, 8, 8
    x = jax.random.normal(k1, (N, Cin, D, H, W), jnp.float32)
    # ConvTranspose3d weight layout is (Cin, Cout, 3, 3, 3)
    w = 0.1 * jax.random.normal(k2, (Cin, Cout, K, K, K), jnp.float32)
    b = 0.1 * jax.random.normal(k3, (Cout,), jnp.float32)
    gamma = 1.0 + 0.1 * jax.random.normal(k4, (Cout,), jnp.float32)
    beta = 0.1 * jax.random.normal(k5, (Cout,), jnp.float32)

    fwd = jax.jit(upsample_forward)
    out = jax.block_until_ready(fwd(x, w, b, gamma, beta))
    assert out.shape == (N, Cout, 2 * D, 2 * H, 2 * W), out.shape

    # Check vs a reference fed with the same bf16-rounded conv operands the
    # kernel uses on the MXU.  Tolerance is looser than v2 because the conv
    # output intermediate is now stored in bf16 (stats remain f32).
    x_q = x.astype(jnp.bfloat16).astype(jnp.float32)
    w_q = w.astype(jnp.bfloat16).astype(jnp.float32)
    ref_q = upsample_reference(x_q, w_q, b, gamma, beta)
    err_q = float(jnp.max(jnp.abs(out - ref_q)))
    assert jnp.allclose(out, ref_q, atol=2e-2, rtol=2e-2), \
        f"max abs err vs bf16-operand ref = {err_q}"

    # Loose end-to-end check vs the full-f32 reference.
    ref = upsample_reference(x, w, b, gamma, beta)
    err = float(jnp.max(jnp.abs(out - ref)))
    assert jnp.allclose(out, ref, atol=6e-2, rtol=6e-2), \
        f"max abs err vs f32 ref = {err}"

    print("KERNEL_OK")
</pallas_src>

<mosaic_0001>
module attributes {stable_mosaic.version = 11 : i64} {
  func.func @_conv_stats_kernel(%arg0: i32, %arg1: memref<512x64xbf16, #tpu.memory_space<vmem>>, %arg2: memref<64x128xbf16, #tpu.memory_space<vmem>>, %arg3: memref<512x128xbf16, #tpu.memory_space<vmem>>, %arg4: memref<1x8x128xf32, #tpu.memory_space<vmem>>, %arg5: memref<1x8x128xf32, #tpu.memory_space<vmem>>) attributes {dimension_semantics = [#tpu.dimension_semantics<parallel>], iteration_bounds = array<i64: 1>, scalar_prefetch = 0 : i64, scratch_operands = 0 : i64, tpu.core_type = #tpu.core_type<tc>, window_params = [{transform_indices = @transform_0, window_bounds = array<i64: 512, 64>}, {pipeline_mode = #tpu.pipeline_mode<synchronous>, transform_indices = @transform_1, window_bounds = array<i64: 64, 128>}, {transform_indices = @transform_2, window_bounds = array<i64: 512, 128>}, {transform_indices = @transform_3, window_bounds = array<i64: 1, 8, 128>}, {transform_indices = @transform_4, window_bounds = array<i64: 1, 8, 128>}]} {
    %c0 = arith.constant 0 : index
    %c0_0 = arith.constant 0 : index
    %0 = vector.load %arg1[%c0, %c0_0] : memref<512x64xbf16, #tpu.memory_space<vmem>>, vector<512x64xbf16>
    %c0_1 = arith.constant 0 : index
    %c0_2 = arith.constant 0 : index
    %1 = vector.load %arg2[%c0_1, %c0_2] : memref<64x128xbf16, #tpu.memory_space<vmem>>, vector<64x128xbf16>
    %cst = arith.constant dense<0.000000e+00> : vector<512x128xf32>
    %2 = tpu.matmul %0, %1, %cst {dimension_numbers = #tpu.dot_dimension_numbers<[1], [0], [0], [1], [0, 0, 1, 1], [], []>} : vector<512x64xbf16>, vector<64x128xbf16>, vector<512x128xf32> -> vector<512x128xf32>
    %3 = arith.truncf %2 : vector<512x128xf32> to vector<512x128xbf16>
    %c0_3 = arith.constant 0 : index
    %c0_4 = arith.constant 0 : index
    %4 = vector.load %arg3[%c0_3, %c0_4] : memref<512x128xbf16, #tpu.memory_space<vmem>>, vector<512x128xbf16>
    tpu.vector_store %arg3[%c0_3, %c0_4], %3 {strides = array<i32>} : memref<512x128xbf16, #tpu.memory_space<vmem>>, vector<512x128xbf16>,
    %cst_5 = arith.constant dense<0.000000e+00> : vector<128xf32>
    %5 = vector.multi_reduction <add>, %2, %cst_5 [0] : vector<512x128xf32> to vector<128xf32>
    %6 = vector.shape_cast %5 : vector<128xf32> to vector<1x128xf32>
    %7 = arith.mulf %2, %2 : vector<512x128xf32>
    %cst_6 = arith.constant dense<0.000000e+00> : vector<128xf32>
    %8 = vector.multi_reduction <add>, %7, %cst_6 [0] : vector<512x128xf32> to vector<128xf32>
    %9 = vector.shape_cast %8 : vector<128xf32> to vector<1x128xf32>
    %10 = vector.shape_cast %6 : vector<1x128xf32> to vector<1x1x128xf32>
    %11 = vector.shape_cast %10 : vector<1x1x128xf32> to vector<1x1x128xf32>
    %12 = vector.broadcast %11 : vector<1x1x128xf32> to vector<1x8x128xf32>
    %c0_7 = arith.constant 0 : index
    %c0_8 = arith.constant 0 : index
    %c0_9 = arith.constant 0 : index
    %13 = vector.load %arg4[%c0_7, %c0_8, %c0_9] : memref<1x8x128xf32, #tpu.memory_space<vmem>>, vector<1x8x128xf32>
    tpu.vector_store %arg4[%c0_7, %c0_8, %c0_9], %12 {strides = array<i32>} : memref<1x8x128xf32, #tpu.memory_space<vmem>>, vector<1x8x128xf32>,
    %14 = vector.shape_cast %9 : vector<1x128xf32> to vector<1x1x128xf32>
    %15 = vector.shape_cast %14 : vector<1x1x128xf32> to vector<1x1x128xf32>
    %16 = vector.broadcast %15 : vector<1x1x128xf32> to vector<1x8x128xf32>
    %c0_10 = arith.constant 0 : index
    %c0_11 = arith.constant 0 : index
    %c0_12 = arith.constant 0 : index
    %17 = vector.load %arg5[%c0_10, %c0_11, %c0_12] : memref<1x8x128xf32, #tpu.memory_space<vmem>>, vector<1x8x128xf32>
    tpu.vector_store %arg5[%c0_10, %c0_11, %c0_12], %16 {strides = array<i32>} : memref<1x8x128xf32, #tpu.memory_space<vmem>>, vector<1x8x128xf32>,
    return
  }
  func.func @transform_0(%arg0: i32) -> (i32, i32) {
    %c0_i32 = arith.constant 0 : i32
    %c0_i32_0 = arith.constant 0 : i32
    return %arg0, %c0_i32 : i32, i32
  }
  func.func @transform_1(%arg0: i32) -> (i32, i32) {
    %c0_i32 = arith.constant 0 : i32
    %c0_i32_0 = arith.constant 0 : i32
    %c0_i32_1 = arith.constant 0 : i32
    return %c0_i32, %c0_i32_0 : i32, i32
  }
  func.func @transform_2(%arg0: i32) -> (i32, i32) {
    %c0_i32 = arith.constant 0 : i32
    %c0_i32_0 = arith.constant 0 : i32
    return %arg0, %c0_i32 : i32, i32
  }
  func.func @transform_3(%arg0: i32) -> (i32, i32, i32) {
    %c0_i32 = arith.constant 0 : i32
    %c0_i32_0 = arith.constant 0 : i32
    %c0_i32_1 = arith.constant 0 : i32
    return %arg0, %c0_i32, %c0_i32_0 : i32, i32, i32
  }
  func.func @transform_4(%arg0: i32) -> (i32, i32, i32) {
    %c0_i32 = arith.constant 0 : i32
    %c0_i32_0 = arith.constant 0 : i32
    %c0_i32_1 = arith.constant 0 : i32
    return %arg0, %c0_i32, %c0_i32_0 : i32, i32, i32
  }
}

</mosaic_0001>

<bundles_post_ra>
// kernel: upsample_forward.1
= control target key start
LH: loop header
LB: loop body
LE: loop exit
PB: predicated region body
PF: predicated region fallthrough
CT: control target
= control target key end

     0   :  { %vm271_vm0 = vcmask 523264   ;;  %s1851_s1 = inlined_call_operand.vmem [shape: bf16[64,128], index: 1, kind: input, shape index: {}]   ;;  %s1852_s0 = inlined_call_operand.vmem [shape: bf16[512,64], index: 0, kind: input, shape index: {}]   ;;  %s1853_s2 = inlined_call_operand.vmem [shape: bf16[512,128], index: 2, kind: output, shape index: {0}]   ;;  %s1854_s3 = inlined_call_operand.vmem [shape: f32[1,8,128], index: 3, kind: output, shape index: {1}]   ;;  %s1855_s4 = inlined_call_operand.vmem [shape: f32[1,8,128], index: 4, kind: output, shape index: {2}]  }
   0x1   :  { %v1092_v0 = vld [vmem:[%s1851_s1 + $0x18] sm:$0xff]  ;;  %v1091_v1 = vld [vmem:[%s1851_s1 + $0x10] sm:$0xff]  ;;  %v1090_v2 = vld [vmem:[%s1851_s1 + $0x8] sm:$0xff] }
   0x2   :  { %372 = vmatpush.bf16.msra.mxu0 %v1092_v0  ;;  %1284 = vmatpush.bf16.msra.mxu1 %v1092_v0  ;;  %v1089_v3 = vld [vmem:[%s1851_s1] sm:$0xff]  ;;  %v1058_v6 = vld [vmem:[%s1852_s0 + $0x8] sm:$0xff]  ;;  %v1059_v9 = vld [vmem:[%s1852_s0 + $0x10] sm:$0xff] }
   0x3   :  { %1285 = vmatpush.bf16.msra.mxu2 %v1092_v0  ;;  %1286 = vmatpush.bf16.msra.mxu3 %v1092_v0  ;;  %v1057_v4 = vld [vmem:[%s1852_s0] sm:$0xff]  ;;  %v1066_v7 = vld [vmem:[%s1852_s0 + $0x48] sm:$0xff]  ;;  %v1067_v10 = vld [vmem:[%s1852_s0 + $0x50] sm:$0xff] }
   0x4   :  { %v1065_v5 = vld [vmem:[%s1852_s0 + $0x40] sm:$0xff]  ;;  %v1074_v11 = vld [vmem:[%s1852_s0 + $0x88] sm:$0xff]  ;;  %v1060_v12 = vld [vmem:[%s1852_s0 + $0x18] sm:$0xff] }
   0x5   :  { %v1073_v8 = vld [vmem:[%s1852_s0 + $0x80] sm:$0xff]  ;;  %v1068_v13 = vld [vmem:[%s1852_s0 + $0x58] sm:$0xff]  ;;  %v1075_v14 = vld [vmem:[%s1852_s0 + $0x90] sm:$0xff] }
   0x6   :  { %373 = vmatpush.bf16.msra.mxu0 %v1091_v1  ;;  %1287 = vmatpush.bf16.msra.mxu1 %v1091_v1  ;;  %v1081_v15 = vld [vmem:[%s1852_s0 + $0xc0] sm:$0xff]  ;;  %v1076_v18 = vld [vmem:[%s1852_s0 + $0x98] sm:$0xff]  ;;  %v1082_v19 = vld [vmem:[%s1852_s0 + $0xc8] sm:$0xff] }
   0x7   :  { %1288 = vmatpush.bf16.msra.mxu2 %v1091_v1  ;;  %1289 = vmatpush.bf16.msra.mxu3 %v1091_v1  ;;  %v1061_v16 = vld [vmem:[%s1852_s0 + $0x20] sm:$0xff]  ;;  %v1062_v20 = vld [vmem:[%s1852_s0 + $0x28] sm:$0xff]  ;;  %v1083_v23 = vld [vmem:[%s1852_s0 + $0xd0] sm:$0xff] }
   0x8   :  { %v1069_v17 = vld [vmem:[%s1852_s0 + $0x60] sm:$0xff]  ;;  %v1070_v21 = vld [vmem:[%s1852_s0 + $0x68] sm:$0xff]  ;;  %v1063_v24 = vld [vmem:[%s1852_s0 + $0x30] sm:$0xff] }
   0x9   :  { %v1077_v22 = vld [vmem:[%s1852_s0 + $0xa0] sm:$0xff]  ;;  %v1071_v25 = vld [vmem:[%s1852_s0 + $0x70] sm:$0xff]  ;;  %v1078_v26 = vld [vmem:[%s1852_s0 + $0xa8] sm:$0xff] }
   0xa   :  { %374 = vmatpush.bf16.msra.mxu0 %v1090_v2  ;;  %1290 = vmatpush.bf16.msra.mxu1 %v1090_v2  ;;  %v1084_v27 = vld [vmem:[%s1852_s0 + $0xd8] sm:$0xff]  ;;  %v1079_v30 = vld [vmem:[%s1852_s0 + $0xb0] sm:$0xff]  ;;  %v1085_v31 = vld [vmem:[%s1852_s0 + $0xe0] sm:$0xff] }
   0xb   :  { %1291 = vmatpush.bf16.msra.mxu2 %v1090_v2  ;;  %1292 = vmatpush.bf16.msra.mxu3 %v1090_v2  ;;  %v1064_v28 = vld [vmem:[%s1852_s0 + $0x38] sm:$0xff]  ;;  %v1086_v35 = vld [vmem:[%s1852_s0 + $0xe8] sm:$0xff]  ;;  %v1087_v49 = vld [vmem:[%s1852_s0 + $0xf0] sm:$0xff] }
   0xc   :  { %v1072_v29 = vld [vmem:[%s1852_s0 + $0x78] sm:$0xff] }
   0xd   :  { %v1080_v34 = vld [vmem:[%s1852_s0 + $0xb8] sm:$0xff] }
   0xe   :  { %375 = vmatpush.bf16.msra.mxu0 %v1089_v3  ;;  %1293 = vmatpush.bf16.msra.mxu1 %v1089_v3  ;;  %v1088_v1 = vld [vmem:[%s1852_s0 + $0xf8] sm:$0xff] }
   0xf   :  { %1294 = vmatpush.bf16.msra.mxu2 %v1089_v3  ;;  %1295 = vmatpush.bf16.msra.mxu3 %v1089_v3 }
  0x11   :  { %1025 = vmatmul.msk.bf16.vlgmr.msra.gmra.mxu0 %vm271_vm0, %v1057_v4  ;;  %1033 = vmatmul.msk.bf16.vlgmr.msra.gmra.mxu1 %vm271_vm0, %v1065_v5 }
  0x12   :  { %1041 = vmatmul.msk.bf16.vlgmr.msra.gmra.mxu2 %vm271_vm0, %v1073_v8  ;;  %1049 = vmatmul.msk.bf16.vlgmr.msra.gmra.mxu3 %vm271_vm0, %v1081_v15 }
  0x21   :  { %1026 = vmatmul.msk.bf16.gmra.mxu0 %vm271_vm0, %v1058_v6  ;;  %1034 = vmatmul.msk.bf16.gmra.mxu1 %vm271_vm0, %v1066_v7 }
  0x22   :  { %1042 = vmatmul.msk.bf16.gmra.mxu2 %vm271_vm0, %v1074_v11  ;;  %1050 = vmatmul.msk.bf16.gmra.mxu3 %vm271_vm0, %v1082_v19 }
  0x31   :  { %1027 = vmatmul.msk.bf16.gmra.mxu0 %vm271_vm0, %v1059_v9  ;;  %1035 = vmatmul.msk.bf16.gmra.mxu1 %vm271_vm0, %v1067_v10 }
  0x32   :  { %1043 = vmatmul.msk.bf16.gmra.mxu2 %vm271_vm0, %v1075_v14  ;;  %1051 = vmatmul.msk.bf16.gmra.mxu3 %vm271_vm0, %v1083_v23 }
  0x41   :  { %1028 = vmatmul.msk.bf16.gmra.mxu0 %vm271_vm0, %v1060_v12  ;;  %1036 = vmatmul.msk.bf16.gmra.mxu1 %vm271_vm0, %v1068_v13 }
  0x42   :  { %1044 = vmatmul.msk.bf16.gmra.mxu2 %vm271_vm0, %v1076_v18  ;;  %1052 = vmatmul.msk.bf16.gmra.mxu3 %vm271_vm0, %v1084_v27 }
  0x51   :  { %1029 = vmatmul.msk.bf16.gmra.mxu0 %vm271_vm0, %v1061_v16  ;;  %1037 = vmatmul.msk.bf16.gmra.mxu1 %vm271_vm0, %v1069_v17 }
  0x52   :  { %1045 = vmatmul.msk.bf16.gmra.mxu2 %vm271_vm0, %v1077_v22  ;;  %1053 = vmatmul.msk.bf16.gmra.mxu3 %vm271_vm0, %v1085_v31 }
  0x61   :  { %1030 = vmatmul.msk.bf16.gmra.mxu0 %vm271_vm0, %v1062_v20  ;;  %1038 = vmatmul.msk.bf16.gmra.mxu1 %vm271_vm0, %v1070_v21 }
  0x62   :  { %1046 = vmatmul.msk.bf16.gmra.mxu2 %vm271_vm0, %v1078_v26  ;;  %1054 = vmatmul.msk.bf16.gmra.mxu3 %vm271_vm0, %v1086_v35 }
  0x71   :  { %1031 = vmatmul.msk.bf16.gmra.mxu0 %vm271_vm0, %v1063_v24  ;;  %1039 = vmatmul.msk.bf16.gmra.mxu1 %vm271_vm0, %v1071_v25 }
  0x72   :  { %1047 = vmatmul.msk.bf16.gmra.mxu2 %vm271_vm0, %v1079_v30  ;;  %1055 = vmatmul.msk.bf16.gmra.mxu3 %vm271_vm0, %v1087_v49 }
  0x81   :  { %1032 = vmatmul.msk.bf16.gmra.mxu0 %vm271_vm0, %v1064_v28  ;;  %1040 = vmatmul.msk.bf16.gmra.mxu1 %vm271_vm0, %v1072_v29 }
  0x82   :  { %1048 = vmatmul.msk.bf16.gmra.mxu2 %vm271_vm0, %v1080_v34  ;;  %1056 = vmatmul.msk.bf16.gmra.mxu3 %vm271_vm0, %v1088_v1 }
  0x8e   :  { %v377_v32 = vpop.f32.mrf.mxu0  ;;  %v1445_v33 = vpop.f32.mrf.mxu1 }
  0x8f   :  { %v734_v36 = vmul.f32 %v377_v32, %v377_v32 }
  0x95   :  { %v1475_v56 = vpop.f32.mrf.mxu2  ;;  %v1527_v16 = vpop.f32.mrf.mxu3 }
  0x96   :  { %v379_v37 = vpop.f32.mrf.mxu0  ;;  %v1455_v38 = vpop.f32.mrf.mxu1 }
  0x97   :  { %v1096_v39 = vpack.c.bf16 %v379_v37, %v377_v32  ;;  %v665_v40 = vadd.f32 %v379_v37, %v377_v32  ;;  %v735_v41 = vmul.f32 %v379_v37, %v379_v37  ;;  %v1136_v42 = vpack.c.bf16 %v1455_v38, %v1445_v33 }
  0x99   :  { %1097 = vst [vmem:[%s1853_s2] sm:$0xff] %v1096_v39   ;;  %v798_v43 = vadd.f32 %v735_v41, %v734_v36 }
  0x9a   :  { %1260 = vst [vmem:[%s1853_s2 + $0x40] sm:$0xff] %v1136_v42  }
  0x9d   :  { %v1487_v62 = vpop.f32.mrf.mxu2  ;;  %v1539_v20 = vpop.f32.mrf.mxu3 }
  0x9e   :  { %v382_v44 = vpop.f32.mrf.mxu0  ;;  %v1465_v45 = vpop.f32.mrf.mxu1  ;;  %v1176_v63 = vpack.c.bf16 %v1487_v62, %v1475_v56  ;;  %v1216_v22 = vpack.c.bf16 %v1539_v20, %v1527_v16 }
  0x9f   :  { %v666_v46 = vadd.f32 %v665_v40, %v382_v44  ;;  %v736_v47 = vmul.f32 %v382_v44, %v382_v44 }
  0xa0   :  { %1268 = vst [vmem:[%s1853_s2 + $0x80] sm:$0xff] %v1176_v63  }
  0xa1   :  { %v799_v48 = vadd.f32 %v798_v43, %v736_v47  ;;  %1276 = vst [vmem:[%s1853_s2 + $0xc0] sm:$0xff] %v1216_v22  }
  0xa5   :  { %v1504_v6 = vpop.f32.mrf.mxu2  ;;  %v1557_v28 = vpop.f32.mrf.mxu3 }
  0xa6   :  { %v384_v50 = vpop.f32.mrf.mxu0  ;;  %v1471_v51 = vpop.f32.mrf.mxu1 }
  0xa7   :  { %v1101_v52 = vpack.c.bf16 %v384_v50, %v382_v44  ;;  %v667_v53 = vadd.f32 %v666_v46, %v384_v50  ;;  %v737_v54 = vmul.f32 %v384_v50, %v384_v50  ;;  %v1141_v55 = vpack.c.bf16 %v1471_v51, %v1465_v45 }
  0xa9   :  { %1253 = vst [vmem:[%s1853_s2 + $0x8] sm:$0xff] %v1101_v52   ;;  %v800_v57 = vadd.f32 %v799_v48, %v737_v54 }
  0xaa   :  { %1261 = vst [vmem:[%s1853_s2 + $0x48] sm:$0xff] %v1141_v55  }
  0xad   :  { %v1514_v9 = vpop.f32.mrf.mxu2  ;;  %v1569_v32 = vpop.f32.mrf.mxu3 }
  0xae   :  { %v387_v58 = vpop.f32.mrf.mxu0  ;;  %v1483_v59 = vpop.f32.mrf.mxu1  ;;  %v1181_v10 = vpack.c.bf16 %v1514_v9, %v1504_v6  ;;  %v1221_v35 = vpack.c.bf16 %v1569_v32, %v1557_v28 }
  0xaf   :  { %v1485_v60 = vadd.f32 %v667_v53, %v387_v58  ;;  %v738_v61 = vmul.f32 %v387_v58, %v387_v58 }
  0xb0   :  { %1269 = vst [vmem:[%s1853_s2 + $0x88] sm:$0xff] %v1181_v10  }
  0xb1   :  { %v1491_v0 = vadd.f32 %v800_v57, %v738_v61  ;;  %1277 = vst [vmem:[%s1853_s2 + $0xc8] sm:$0xff] %v1221_v35  }
  0xb5   :  { %v1525_v15 = vpop.f32.mrf.mxu2  ;;  %v1587_v42 = vpop.f32.mrf.mxu3 }
  0xb6   :  { %v389_v2 = vpop.f32.mrf.mxu0  ;;  %v1500_v3 = vpop.f32.mrf.mxu1 }
  0xb7   :  { %v1106_v4 = vpack.c.bf16 %v389_v2, %v387_v58  ;;  %v1146_v5 = vpack.c.bf16 %v1500_v3, %v1483_v59  ;;  %v739_v48 = vmul.f32 %v389_v2, %v389_v2  ;;  %v669_v53 = vadd.f32 %v1485_v60, %v389_v2 }
  0xb9   :  { %1254 = vst [vmem:[%s1853_s2 + $0x10] sm:$0xff] %v1106_v4   ;;  %v802_v54 = vadd.f32 %v1491_v0, %v739_v48 }
  0xba   :  { %1262 = vst [vmem:[%s1853_s2 + $0x50] sm:$0xff] %v1146_v5  }
  0xbd   :  { %v1537_v19 = vpop.f32.mrf.mxu2  ;;  %v1599_v47 = vpop.f32.mrf.mxu3 }
  0xbe   :  { %v392_v7 = vpop.f32.mrf.mxu0  ;;  %v1512_v8 = vpop.f32.mrf.mxu1  ;;  %v1186_v21 = vpack.c.bf16 %v1537_v19, %v1525_v15  ;;  %v1226_v50 = vpack.c.bf16 %v1599_v47, %v1587_v42 }
  0xbf   :  { %v740_v52 = vmul.f32 %v392_v7, %v392_v7  ;;  %v670_v57 = vadd.f32 %v669_v53, %v392_v7 }
  0xc0   :  { %1270 = vst [vmem:[%s1853_s2 + $0x90] sm:$0xff] %v1186_v21  }
  0xc1   :  { %1278 = vst [vmem:[%s1853_s2 + $0xd0] sm:$0xff] %v1226_v50   ;;  %v803_v58 = vadd.f32 %v802_v54, %v740_v52 }
  0xc5   :  { %v1555_v27 = vpop.f32.mrf.mxu2  ;;  %v1619_v60 = vpop.f32.mrf.mxu3 }
  0xc6   :  { %v394_v11 = vpop.f32.mrf.mxu0  ;;  %v1521_v12 = vpop.f32.mrf.mxu1 }
  0xc7   :  { %v1111_v13 = vpack.c.bf16 %v394_v11, %v392_v7  ;;  %v1151_v14 = vpack.c.bf16 %v1521_v12, %v1512_v8  ;;  %v741_v55 = vmul.f32 %v394_v11, %v394_v11  ;;  %v671_v4 = vadd.f32 %v670_v57, %v394_v11 }
  0xc9   :  { %1255 = vst [vmem:[%s1853_s2 + $0x18] sm:$0xff] %v1111_v13   ;;  %v804_v2 = vadd.f32 %v803_v58, %v741_v55 }
  0xca   :  { %1263 = vst [vmem:[%s1853_s2 + $0x58] sm:$0xff] %v1151_v14  }
  0xcd   :  { %v1567_v31 = vpop.f32.mrf.mxu2 }
  0xce   :  { %v397_v17 = vpop.f32.mrf.mxu0  ;;  %v1535_v18 = vpop.f32.mrf.mxu1  ;;  %v1191_v34 = vpack.c.bf16 %v1567_v31, %v1555_v27 }
  0xcf   :  { %v742_v61 = vmul.f32 %v397_v17, %v397_v17  ;;  %v672_v21 = vadd.f32 %v671_v4, %v397_v17 }
  0xd0   :  { %1271 = vst [vmem:[%s1853_s2 + $0x98] sm:$0xff] %v1191_v34  }
  0xd1   :  { %v805_v0 = vadd.f32 %v804_v2, %v742_v61 }
  0xd5   :  { %v1585_v41 = vpop.f32.mrf.mxu2 }
  0xd6   :  { %v399_v23 = vpop.f32.mrf.mxu0  ;;  %v1551_v24 = vpop.f32.mrf.mxu1 }
  0xd7   :  { %v1116_v25 = vpack.c.bf16 %v399_v23, %v397_v17  ;;  %v1156_v26 = vpack.c.bf16 %v1551_v24, %v1535_v18  ;;  %v743_v14 = vmul.f32 %v399_v23, %v399_v23  ;;  %v673_v11 = vadd.f32 %v672_v21, %v399_v23 }
  0xd9   :  { %1256 = vst [vmem:[%s1853_s2 + $0x20] sm:$0xff] %v1116_v25   ;;  %v806_v22 = vadd.f32 %v805_v0, %v743_v14 }
  0xda   :  { %1264 = vst [vmem:[%s1853_s2 + $0x60] sm:$0xff] %v1156_v26  }
  0xdd   :  { %v1597_v46 = vpop.f32.mrf.mxu2 }
  0xde   :  { %v402_v29 = vpop.f32.mrf.mxu0  ;;  %v1565_v30 = vpop.f32.mrf.mxu1  ;;  %v1196_v49 = vpack.c.bf16 %v1597_v46, %v1585_v41 }
  0xdf   :  { %v744_v7 = vmul.f32 %v402_v29, %v402_v29  ;;  %v674_v26 = vadd.f32 %v673_v11, %v402_v29 }
  0xe0   :  { %1272 = vst [vmem:[%s1853_s2 + $0xa0] sm:$0xff] %v1196_v49   ;;  %v1631_v49 = vpop.f32.mrf.mxu3 }
  0xe1   :  { %v807_v34 = vadd.f32 %v806_v22, %v744_v7  ;;  %v1231_v23 = vpack.c.bf16 %v1631_v49, %v1619_v60  ;;  %v751_v22 = vmul.f32 %v1455_v38, %v1455_v38 }
  0xe3   :  { %1279 = vst [vmem:[%s1853_s2 + $0xd8] sm:$0xff] %v1231_v23  }
  0xe5   :  { %v1617_v13 = vpop.f32.mrf.mxu2 }
  0xe6   :  { %v404_v36 = vpop.f32.mrf.mxu0  ;;  %v1581_v37 = vpop.f32.mrf.mxu1 }
  0xe7   :  { %v1121_v39 = vpack.c.bf16 %v404_v36, %v402_v29  ;;  %v1161_v40 = vpack.c.bf16 %v1581_v37, %v1565_v30  ;;  %v745_v25 = vmul.f32 %v404_v36, %v404_v36  ;;  %v675_v17 = vadd.f32 %v674_v26, %v404_v36 }
  0xe8   :  { %v1649_v0 = vpop.f32.mrf.mxu3 }
  0xe9   :  { %1257 = vst [vmem:[%s1853_s2 + $0x28] sm:$0xff] %v1121_v39   ;;  %v808_v50 = vadd.f32 %v807_v34, %v745_v25  ;;  %v752_v34 = vmul.f32 %v1465_v45, %v1465_v45 }
  0xea   :  { %1265 = vst [vmem:[%s1853_s2 + $0x68] sm:$0xff] %v1161_v40  }
  0xed   :  { %v1629_v48 = vpop.f32.mrf.mxu2 }
  0xee   :  { %v407_v43 = vpop.f32.mrf.mxu0  ;;  %v1595_v44 = vpop.f32.mrf.mxu1  ;;  %v1201_v53 = vpack.c.bf16 %v1629_v48, %v1617_v13 }
  0xef   :  { %v746_v35 = vmul.f32 %v407_v43, %v407_v43  ;;  %v676_v54 = vadd.f32 %v675_v17, %v407_v43 }
  0xf0   :  { %1273 = vst [vmem:[%s1853_s2 + $0xa8] sm:$0xff] %v1201_v53   ;;  %v1671_v53 = vpop.f32.mrf.mxu3 }
  0xf1   :  { %v809_v29 = vadd.f32 %v808_v50, %v746_v35  ;;  %v1236_v23 = vpack.c.bf16 %v1671_v53, %v1649_v0 }
  0xf3   :  { %1280 = vst [vmem:[%s1853_s2 + $0xe0] sm:$0xff] %v1236_v23  }
  0xf5   :  { %v1647_v21 = vpop.f32.mrf.mxu2 }
  0xf6   :  { %v409_v63 = vpop.f32.mrf.mxu0  ;;  %v1613_v1 = vpop.f32.mrf.mxu1 }
  0xf7   :  { %v1126_v5 = vpack.c.bf16 %v409_v63, %v407_v43  ;;  %v1166_v10 = vpack.c.bf16 %v1613_v1, %v1595_v44  ;;  %v747_v52 = vmul.f32 %v409_v63, %v409_v63  ;;  %v677_v36 = vadd.f32 %v676_v54, %v409_v63 }
  0xf8   :  { %v750_v63 = vmul.f32 %v1445_v33, %v1445_v33  ;;  %v763_v23 = vmul.f32 %v1613_v1, %v1613_v1 }
  0xf9   :  { %1258 = vst [vmem:[%s1853_s2 + $0x30] sm:$0xff] %v1126_v5   ;;  %v810_v57 = vadd.f32 %v809_v29, %v747_v52 }
  0xfa   :  { %1266 = vst [vmem:[%s1853_s2 + $0x70] sm:$0xff] %v1166_v10  }
  0xfd   :  { %v1669_v52 = vpop.f32.mrf.mxu2 }
  0xfe   :  { %v412_v39 = vpop.f32.mrf.mxu0  ;;  %v1627_v40 = vpop.f32.mrf.mxu1 }
  0xff   :  { %v748_v55 = vmul.f32 %v412_v39, %v412_v39  ;;  %v678_v58 = vadd.f32 %v677_v36, %v412_v39 }
 0x101   :  { %v811_v61 = vadd.f32 %v810_v57, %v748_v55  ;;  %v756_v57 = vmul.f32 %v1512_v8, %v1512_v8 }
 0x106   :  { %v414_v4 = vpop.f32.mrf.mxu0  ;;  %v1643_v5 = vpop.f32.mrf.mxu1 }
 0x107   :  { %v1131_v10 = vpack.c.bf16 %v414_v4, %v412_v39  ;;  %v679_v2 = vadd.f32 %v678_v58, %v414_v4  ;;  %v749_v43 = vmul.f32 %v414_v4, %v414_v4  ;;  %v1171_v14 = vpack.c.bf16 %v1643_v5, %v1627_v40 }
 0x109   :  { %1259 = vst [vmem:[%s1853_s2 + $0x38] sm:$0xff] %v1131_v10   ;;  %v680_v7 = vadd.f32 %v679_v2, %v1445_v33  ;;  %v812_v11 = vadd.f32 %v811_v61, %v749_v43  ;;  %v753_v33 = vmul.f32 %v1471_v51, %v1471_v51  ;;  %v757_v61 = vmul.f32 %v1521_v12, %v1521_v12  ;;  %v1695_v2 = vpop.f32.mrf.mxu2 }
 0x10a   :  { %1267 = vst [vmem:[%s1853_s2 + $0x78] sm:$0xff] %v1171_v14   ;;  %v758_v43 = vmul.f32 %v1535_v18, %v1535_v18 }
 0x10b   :  { %v681_v25 = vadd.f32 %v680_v7, %v1455_v38  ;;  %v813_v26 = vadd.f32 %v812_v11, %v750_v63  ;;  %v1206_v38 = vpack.c.bf16 %v1669_v52, %v1647_v21  ;;  %v759_v7 = vmul.f32 %v1551_v24, %v1551_v24 }
 0x10d   :  { %v682_v35 = vadd.f32 %v681_v25, %v1465_v45  ;;  %v814_v39 = vadd.f32 %v813_v26, %v751_v22  ;;  %v754_v45 = vmul.f32 %v1483_v59, %v1483_v59  ;;  %1274 = vst [vmem:[%s1853_s2 + $0xb0] sm:$0xff] %v1206_v38   ;;  %v761_v26 = vmul.f32 %v1581_v37, %v1581_v37 }
 0x10f   :  { %v683_v17 = vadd.f32 %v682_v35, %v1471_v51  ;;  %v815_v50 = vadd.f32 %v814_v39, %v752_v34  ;;  %v755_v51 = vmul.f32 %v1500_v3, %v1500_v3 }
 0x111   :  { %v684_v54 = vadd.f32 %v683_v17, %v1483_v59  ;;  %v816_v29 = vadd.f32 %v815_v50, %v753_v33 }
 0x113   :  { %v685_v55 = vadd.f32 %v684_v54, %v1500_v3  ;;  %v817_v36 = vadd.f32 %v816_v29, %v754_v45  ;;  %v1697_v3 = vpop.f32.mrf.mxu3 }
 0x115   :  { %v818_v58 = vadd.f32 %v817_v36, %v755_v51  ;;  %v686_v59 = vadd.f32 %v685_v55, %v1512_v8  ;;  %v765_v55 = vmul.f32 %v1643_v5, %v1643_v5 }
 0x117   :  { %v687_v4 = vadd.f32 %v686_v59, %v1521_v12  ;;  %v819_v10 = vadd.f32 %v818_v58, %v756_v57  ;;  %v760_v12 = vmul.f32 %v1565_v30, %v1565_v30  ;;  %v767_v59 = vmul.f32 %v1487_v62, %v1487_v62 }
 0x119   :  { %v688_v14 = vadd.f32 %v687_v4, %v1535_v18  ;;  %v820_v63 = vadd.f32 %v819_v10, %v757_v61  ;;  %v1711_v18 = vpop.f32.mrf.mxu2  ;;  %v768_v4 = vmul.f32 %v1504_v6, %v1504_v6 }
 0x11b   :  { %v689_v8 = vadd.f32 %v688_v14, %v1551_v24  ;;  %v821_v11 = vadd.f32 %v820_v63, %v758_v43  ;;  %v1713_v39 = vpop.f32.mrf.mxu3  ;;  %v1211_v24 = vpack.c.bf16 %v1711_v18, %v1695_v2  ;;  %v769_v43 = vmul.f32 %v1514_v9, %v1514_v9 }
 0x11c   :  { %v1241_v33 = vpack.c.bf16 %v1713_v39, %v1697_v3 }
 0x11d   :  { %v690_v22 = vadd.f32 %v689_v8, %v1565_v30  ;;  %v822_v25 = vadd.f32 %v821_v11, %v759_v7  ;;  %v762_v30 = vmul.f32 %v1595_v44, %v1595_v44  ;;  %1275 = vst [vmem:[%s1853_s2 + $0xb8] sm:$0xff] %v1211_v24  }
 0x11e   :  { %1281 = vst [vmem:[%s1853_s2 + $0xe8] sm:$0xff] %v1241_v33   ;;  %v774_v33 = vmul.f32 %v1585_v41, %v1585_v41 }
 0x11f   :  { %v691_v34 = vadd.f32 %v690_v22, %v1581_v37  ;;  %v823_v35 = vadd.f32 %v822_v25, %v760_v12  ;;  %v772_v22 = vmul.f32 %v1555_v27, %v1555_v27 }
 0x121   :  { %v692_v17 = vadd.f32 %v691_v34, %v1595_v44  ;;  %v824_v50 = vadd.f32 %v823_v35, %v761_v26  ;;  %v764_v44 = vmul.f32 %v1627_v40, %v1627_v40 }
 0x123   :  { %v825_v37 = vadd.f32 %v824_v50, %v762_v30  ;;  %v693_v38 = vadd.f32 %v692_v17, %v1613_v1  ;;  %v1737_v36 = vpop.f32.mrf.mxu3  ;;  %v766_v1 = vmul.f32 %v1475_v56, %v1475_v56  ;;  %v775_v30 = vmul.f32 %v1597_v46, %v1597_v46 }
 0x125   :  { %v826_v45 = vadd.f32 %v825_v37, %v763_v23  ;;  %v694_v54 = vadd.f32 %v693_v38, %v1627_v40  ;;  %v776_v37 = vmul.f32 %v1617_v13, %v1617_v13 }
 0x127   :  { %v827_v29 = vadd.f32 %v826_v45, %v764_v44  ;;  %v695_v51 = vadd.f32 %v694_v54, %v1643_v5  ;;  %v777_v45 = vmul.f32 %v1629_v48, %v1629_v48 }
 0x129   :  { %v696_v57 = vadd.f32 %v695_v51, %v1475_v56  ;;  %v828_v58 = vadd.f32 %v827_v29, %v765_v55 }
 0x12b   :  { %v697_v61 = vadd.f32 %v696_v57, %v1487_v62  ;;  %v829_v40 = vadd.f32 %v828_v58, %v766_v1  ;;  %v1751_v56 = vpop.f32.mrf.mxu3  ;;  %v770_v62 = vmul.f32 %v1525_v15, %v1525_v15  ;;  %v780_v58 = vmul.f32 %v1695_v2, %v1695_v2 }
 0x12c   :  { %v1246_v7 = vpack.c.bf16 %v1751_v56, %v1737_v36 }
 0x12d   :  { %v698_v10 = vadd.f32 %v697_v61, %v1504_v6  ;;  %v830_v5 = vadd.f32 %v829_v40, %v767_v59  ;;  %v771_v6 = vmul.f32 %v1537_v19, %v1537_v19  ;;  %v782_v40 = vmul.f32 %v1527_v16, %v1527_v16 }
 0x12e   :  { %1282 = vst [vmem:[%s1853_s2 + $0xf0] sm:$0xff] %v1246_v7  }
 0x12f   :  { %v699_v14 = vadd.f32 %v698_v10, %v1514_v9  ;;  %v831_v63 = vadd.f32 %v830_v5, %v768_v4 }
 0x131   :  { %v700_v8 = vadd.f32 %v699_v14, %v1525_v15  ;;  %v832_v11 = vadd.f32 %v831_v63, %v769_v43  ;;  %v773_v15 = vmul.f32 %v1567_v31, %v1567_v31 }
 0x133   :  { %v701_v9 = vadd.f32 %v700_v8, %v1537_v19  ;;  %v833_v12 = vadd.f32 %v832_v11, %v770_v62  ;;  %v1770_v24 = vpop.f32.mrf.mxu3 }
 0x135   :  { %v834_v25 = vadd.f32 %v833_v12, %v771_v6  ;;  %v702_v26 = vadd.f32 %v701_v9, %v1555_v27 }
 0x137   :  { %v703_v34 = vadd.f32 %v702_v26, %v1567_v31  ;;  %v835_v35 = vadd.f32 %v834_v25, %v772_v22 }
 0x139   :  { %v704_v19 = vadd.f32 %v703_v34, %v1585_v41  ;;  %v836_v17 = vadd.f32 %v835_v35, %v773_v15 }
 0x13b   :  { %v705_v50 = vadd.f32 %v704_v19, %v1597_v46  ;;  %v837_v27 = vadd.f32 %v836_v17, %v774_v33  ;;  %v534_v41 = vpop.f32.mrf.mxu3  ;;  %v778_v46 = vmul.f32 %v1647_v21, %v1647_v21 }
 0x13c   :  { %v1251_v44 = vpack.c.bf16 %v534_v41, %v1770_v24 }
 0x13d   :  { %v706_v31 = vadd.f32 %v705_v50, %v1617_v13  ;;  %v838_v38 = vadd.f32 %v837_v27, %v775_v30  ;;  %v793_v30 = vmul.f32 %v1713_v39, %v1713_v39 }
 0x13e   :  { %1283 = vst [vmem:[%s1853_s2 + $0xf8] sm:$0xff] %v1251_v44   ;;  %v797_v44 = vmul.f32 %v534_v41, %v534_v41 }
 0x13f   :  { %v707_v23 = vadd.f32 %v706_v31, %v1629_v48  ;;  %v839_v54 = vadd.f32 %v838_v38, %v776_v37  ;;  %v779_v48 = vmul.f32 %v1669_v52, %v1669_v52  ;;  %v794_v37 = vmul.f32 %v1737_v36, %v1737_v36 }
 0x140   :  { %v795_v38 = vmul.f32 %v1751_v56, %v1751_v56 }
 0x141   :  { %v840_v29 = vadd.f32 %v839_v54, %v777_v45  ;;  %v708_v51 = vadd.f32 %v707_v23, %v1647_v21  ;;  %v781_v21 = vmul.f32 %v1711_v18, %v1711_v18  ;;  %v796_v45 = vmul.f32 %v1770_v24, %v1770_v24 }
 0x143   :  { %v841_v13 = vadd.f32 %v840_v29, %v778_v46  ;;  %v709_v55 = vadd.f32 %v708_v51, %v1669_v52  ;;  %v783_v52 = vmul.f32 %v1539_v20, %v1539_v20 }
 0x145   :  { %v842_v1 = vadd.f32 %v841_v13, %v779_v48  ;;  %v710_v57 = vadd.f32 %v709_v55, %v1695_v2  ;;  %v784_v2 = vmul.f32 %v1557_v28, %v1557_v28 }
 0x147   :  { %v843_v59 = vadd.f32 %v842_v1, %v780_v58  ;;  %v711_v61 = vadd.f32 %v710_v57, %v1711_v18  ;;  %v785_v18 = vmul.f32 %v1569_v32, %v1569_v32 }
 0x149   :  { %v712_v4 = vadd.f32 %v711_v61, %v1527_v16  ;;  %v844_v10 = vadd.f32 %v843_v59, %v781_v21  ;;  %v786_v16 = vmul.f32 %v1587_v42, %v1587_v42 }
 0x14b   :  { %v713_v5 = vadd.f32 %v712_v4, %v1539_v20  ;;  %v845_v43 = vadd.f32 %v844_v10, %v782_v40  ;;  %v787_v20 = vmul.f32 %v1599_v47, %v1599_v47 }
 0x14d   :  { %v714_v14 = vadd.f32 %v713_v5, %v1557_v28  ;;  %v846_v63 = vadd.f32 %v845_v43, %v783_v52  ;;  %v788_v28 = vmul.f32 %v1619_v60, %v1619_v60 }
 0x14f   :  { %v715_v7 = vadd.f32 %v714_v14, %v1569_v32  ;;  %v847_v62 = vadd.f32 %v846_v63, %v784_v2  ;;  %v789_v32 = vmul.f32 %v1631_v49, %v1631_v49 }
 0x151   :  { %v716_v8 = vadd.f32 %v715_v7, %v1587_v42  ;;  %v848_v11 = vadd.f32 %v847_v62, %v785_v18  ;;  %v790_v42 = vmul.f32 %v1649_v0, %v1649_v0 }
 0x153   :  { %v717_v6 = vadd.f32 %v716_v8, %v1599_v47  ;;  %v849_v9 = vadd.f32 %v848_v11, %v786_v16  ;;  %v791_v47 = vmul.f32 %v1671_v53, %v1671_v53 }
 0x155   :  { %v850_v12 = vadd.f32 %v849_v9, %v787_v20  ;;  %v718_v22 = vadd.f32 %v717_v6, %v1619_v60  ;;  %v792_v60 = vmul.f32 %v1697_v3, %v1697_v3 }
 0x157   :  { %v719_v25 = vadd.f32 %v718_v22, %v1631_v49  ;;  %v851_v26 = vadd.f32 %v850_v12, %v788_v28 }
 0x159   :  { %v720_v15 = vadd.f32 %v719_v25, %v1649_v0  ;;  %v852_v34 = vadd.f32 %v851_v26, %v789_v32 }
 0x15b   :  { %v721_v35 = vadd.f32 %v720_v15, %v1671_v53  ;;  %v853_v33 = vadd.f32 %v852_v34, %v790_v42 }
 0x15d   :  { %v722_v19 = vadd.f32 %v721_v35, %v1697_v3  ;;  %v854_v17 = vadd.f32 %v853_v33, %v791_v47 }
 0x15f   :  { %v723_v49 = vadd.f32 %v722_v19, %v1713_v39  ;;  %v855_v50 = vadd.f32 %v854_v17, %v792_v60 }
 0x161   :  { %v856_v0 = vadd.f32 %v855_v50, %v793_v30  ;;  %v724_v27 = vadd.f32 %v723_v49, %v1737_v36 }
 0x163   :  { %v857_v53 = vadd.f32 %v856_v0, %v794_v37  ;;  %v725_v31 = vadd.f32 %v724_v27, %v1751_v56 }
 0x165   :  { %v858_v3 = vadd.f32 %v857_v53, %v795_v38  ;;  %v726_v23 = vadd.f32 %v725_v31, %v1770_v24 }
 0x167   :  { %v859_v39 = vadd.f32 %v858_v3, %v796_v45  ;;  %v727_v54 = vadd.f32 %v726_v23, %v534_v41 }
 0x169   :  { %v728_v29 = vrot.slane %v727_v54, 4  ;;  %v860_v51 = vadd.f32 %v859_v39, %v797_v44 }
 0x16b   :  { %v729_v46 = vadd.f32 %v728_v29, %v727_v54  ;;  %v861_v13 = vrot.slane %v860_v51, 4 }
 0x16d   :  { %v730_v36 = vrot.slane %v729_v46, 2  ;;  %v862_v55 = vadd.f32 %v861_v13, %v860_v51 }
 0x16f   :  { %v731_v48 = vadd.f32 %v730_v36, %v729_v46  ;;  %v863_v1 = vrot.slane %v862_v55, 2 }
 0x171   :  { %v732_v57 = vrot.slane %v731_v48, 1  ;;  %v864_v58 = vadd.f32 %v863_v1, %v862_v55 }
 0x173   :  { %v733_v56 = vadd.f32 %v732_v57, %v731_v48  ;;  %v865_v59 = vrot.slane %v864_v58, 1 }
 0x175   :  { %v866_v61 = vadd.f32 %v865_v59, %v864_v58  ;;  %867 = vst [vmem:[%s1854_s3] sm:$0xff] %v733_v56 }
 0x177   :  { %868 = vst [vmem:[%s1855_s4] sm:$0xff] %v866_v61 }

</bundles_post_ra>
